<compile_context>
chip_gen: v7x
topology: tpu7x:2x2x1
jax: 0.10.0
libtpu: 0.0.40
codegen_flags: <defaults>
</compile_context>

<pallas_src>
import functools

import jax
import jax.numpy as jnp
from jax import lax
from jax.experimental import pallas as pl
from jax.experimental.pallas import tpu as pltpu

LANE = 128


def _round_up(n, m):
    return ((n + m - 1) // m) * m


def _fused_attention_kernel(dm_p, x_ref, w_ref, b_ref, out_ref):
    """x_ref: [B, dt_p+dmol_p], w_ref: [dt_p+dmol_p, 3*dm_p], b_ref: [1, 3*dm_p]."""
    x = x_ref[...]

    # Single fused projection: [B, dt_p+dmol_p] @ [dt_p+dmol_p, 3*dm_p]
    qkv = jnp.dot(x, w_ref[...], preferred_element_type=jnp.float32) + b_ref[...]

    q = qkv[:, 0 * dm_p:1 * dm_p]   # already pre-scaled by 1/sqrt(d_model)
    k = qkv[:, 1 * dm_p:2 * dm_p]
    v = qkv[:, 2 * dm_p:3 * dm_p]

    # attention_scores = (Q / sqrt(d_model)) @ K^T, via dot_general contracting
    # the last dim of both operands (no explicit transpose).
    scores = lax.dot_general(
        q, k,
        dimension_numbers=(((1,), (1,)), ((), ())),
        preferred_element_type=jnp.float32,
    )  # [B, B]

    # Numerically stable softmax over the last dim.
    m = jnp.max(scores, axis=-1, keepdims=True)
    e = jnp.exp(scores - m)
    denom = jnp.sum(e, axis=-1, keepdims=True)
    weights = e * pl.reciprocal(denom, approx=True)

    # output = attention_weights @ V   (lane-dense [B, dm_p] store)
    out_ref[...] = jnp.dot(
        weights, v, preferred_element_type=jnp.float32
    ).astype(out_ref.dtype)


def init_params(key, d_molecule, d_text, d_model):
    """Deterministic init mirroring nn.Linear (weights stored as [in, out])."""
    ks = jax.random.split(key, 6)

    def lin(kw, kb, fan_in, fan_out):
        bound = 1.0 / jnp.sqrt(jnp.float32(fan_in))
        w = jax.random.uniform(kw, (fan_in, fan_out), jnp.float32, -bound, bound)
        b = jax.random.uniform(kb, (1, fan_out), jnp.float32, -bound, bound)
        return w, b

    wq, bq = lin(ks[0], ks[1], d_text, d_model)
    wk, bk = lin(ks[2], ks[3], d_text, d_model)
    wv, bv = lin(ks[4], ks[5], d_molecule, d_model)
    return {"wq": wq, "bq": bq, "wk": wk, "bk": bk, "wv": wv, "bv": bv}


def pack_params(p, d_molecule, d_text, d_model):
    """Pad to 128 lanes, fold 1/sqrt(d_model) into Q, pack W_Q|W_K|W_V into one
    block-diagonal weight and one bias row (done once, amortized)."""
    dt_p = _round_up(d_text, LANE)
    dmol_p = _round_up(d_molecule, LANE)
    dm_p = _round_up(d_model, LANE)
    inv_scale = 1.0 / (float(d_model) ** 0.5)

    def pad2(a, rows, cols):
        return jnp.pad(a, ((0, rows - a.shape[0]), (0, cols - a.shape[1])))

    wq = pad2(p["wq"] * inv_scale, dt_p, dm_p)
    wk = pad2(p["wk"], dt_p, dm_p)
    wv = pad2(p["wv"], dmol_p, dm_p)

    # Row block 0: text features feed Q and K; row block 1: molecule features feed V.
    w_top = jnp.concatenate([wq, wk, jnp.zeros((dt_p, dm_p), jnp.float32)], axis=1)
    w_bot = jnp.concatenate([jnp.zeros((dmol_p, 2 * dm_p), jnp.float32), wv], axis=1)
    w_packed = jnp.concatenate([w_top, w_bot], axis=0)          # [dt_p+dmol_p, 3*dm_p]

    b_packed = jnp.concatenate(
        [pad2(p["bq"] * inv_scale, 1, dm_p),
         pad2(p["bk"], 1, dm_p),
         pad2(p["bv"], 1, dm_p)],
        axis=1,
    )                                                            # [1, 3*dm_p]

    return {
        "w": w_packed,
        "b": b_packed,
        "d_model": d_model,
        "d_model_p": dm_p,
        "d_text_p": dt_p,
        "d_mol_p": dmol_p,
    }


def attention_fusion(mol_emb, txt_emb, packed):
    B = txt_emb.shape[0]
    d_model = packed["d_model"]
    dm_p = packed["d_model_p"]
    dt_p = packed["d_text_p"]
    dmol_p = packed["d_mol_p"]

    # Lane-pad the two embeddings and pack them into one activation slab
    # (one input DMA instead of two sub-vreg ones).
    txt_p = jnp.pad(txt_emb, ((0, 0), (0, dt_p - txt_emb.shape[1])))
    mol_p = jnp.pad(mol_emb, ((0, 0), (0, dmol_p - mol_emb.shape[1])))
    x = jnp.concatenate([txt_p, mol_p], axis=1)                  # [B, dt_p+dmol_p]

    kernel = functools.partial(_fused_attention_kernel, dm_p)

    out_pad = pl.pallas_call(
        kernel,
        out_shape=jax.ShapeDtypeStruct((B, dm_p), jnp.float32),
        in_specs=[pl.BlockSpec(memory_space=pltpu.MemorySpace.VMEM)] * 3,
        out_specs=pl.BlockSpec(memory_space=pltpu.MemorySpace.VMEM),
    )(x, packed["w"], packed["b"])

    return out_pad[:, :d_model]


def reference_forward(mol_emb, txt_emb, p):
    q = txt_emb @ p["wq"] + p["bq"]
    k = txt_emb @ p["wk"] + p["bk"]
    v = mol_emb @ p["wv"] + p["bv"]
    scores = (q @ k.T) / jnp.sqrt(jnp.float32(p["wq"].shape[1]))
    w = jax.nn.softmax(scores, axis=-1)
    return w @ v


if __name__ == "__main__":
    # Small shapes implied by the forward: 2-D embeddings [batch, features].
    B, d_molecule, d_text, d_model = 8, 32, 32, 32

    key = jax.random.PRNGKey(0)
    k_mol, k_txt, k_params = jax.random.split(key, 3)

    molecule_embedding = jax.random.normal(k_mol, (B, d_molecule), jnp.float32)
    text_emb = jax.random.normal(k_txt, (B, d_text), jnp.float32)

    params = init_params(k_params, d_molecule, d_text, d_model)
    packed = pack_params(params, d_molecule, d_text, d_model)

    out = attention_fusion(molecule_embedding, text_emb, packed)
    out = jax.block_until_ready(out)

    ref = reference_forward(molecule_embedding, text_emb, params)
    assert out.shape == (B, d_model)
    # approx=True reciprocal in the softmax -> tolerance relaxed from 1e-5.
    max_err = jnp.max(jnp.abs(out - ref))
    assert jnp.allclose(out, ref, atol=2e-3, rtol=2e-3), (
        f"mismatch vs reference (max abs err={max_err})"
    )

    print("KERNEL_OK")
</pallas_src>

<mosaic_0001>
module attributes {stable_mosaic.version = 11 : i64} {
  func.func @_fused_attention_kernel(%arg0: memref<8x256xf32, #tpu.memory_space<vmem>>, %arg1: memref<256x384xf32, #tpu.memory_space<vmem>>, %arg2: memref<1x384xf32, #tpu.memory_space<vmem>>, %arg3: memref<8x128xf32, #tpu.memory_space<vmem>>) attributes {dimension_semantics = [], scalar_prefetch = 0 : i64, scratch_operands = 0 : i64, tpu.core_type = #tpu.core_type<tc>} {
    %c0 = arith.constant 0 : index
    %c0_0 = arith.constant 0 : index
    %0 = vector.load %arg0[%c0, %c0_0] : memref<8x256xf32, #tpu.memory_space<vmem>>, vector<8x256xf32>
    %c0_1 = arith.constant 0 : index
    %c0_2 = arith.constant 0 : index
    %1 = vector.load %arg1[%c0_1, %c0_2] : memref<256x384xf32, #tpu.memory_space<vmem>>, vector<256x384xf32>
    %cst = arith.constant dense<0.000000e+00> : vector<8x384xf32>
    %2 = tpu.matmul %0, %1, %cst {dimension_numbers = #tpu.dot_dimension_numbers<[1], [0], [0], [1], [0, 0, 1, 1], [], []>} : vector<8x256xf32>, vector<256x384xf32>, vector<8x384xf32> -> vector<8x384xf32>
    %c0_3 = arith.constant 0 : index
    %c0_4 = arith.constant 0 : index
    %3 = vector.load %arg2[%c0_3, %c0_4] : memref<1x384xf32, #tpu.memory_space<vmem>>, vector<1x384xf32>
    %4 = vector.broadcast %3 : vector<1x384xf32> to vector<8x384xf32>
    %5 = arith.addf %2, %4 : vector<8x384xf32>
    %6 = vector.extract_strided_slice %5 {offsets = [0, 0], sizes = [8, 128], strides = [1, 1]} : vector<8x384xf32> to vector<8x128xf32>
    %7 = vector.extract_strided_slice %5 {offsets = [0, 128], sizes = [8, 128], strides = [1, 1]} : vector<8x384xf32> to vector<8x128xf32>
    %8 = vector.extract_strided_slice %5 {offsets = [0, 256], sizes = [8, 128], strides = [1, 1]} : vector<8x384xf32> to vector<8x128xf32>
    %cst_5 = arith.constant dense<0.000000e+00> : vector<8x8xf32>
    %9 = tpu.matmul %6, %7, %cst_5 {dimension_numbers = #tpu.dot_dimension_numbers<[1], [1], [0], [0], [0, 0, 1, 0], [], []>} : vector<8x128xf32>, vector<8x128xf32>, vector<8x8xf32> -> vector<8x8xf32>
    %cst_6 = arith.constant dense<0xFF800000> : vector<8xf32>
    %10 = vector.multi_reduction <maximumf>, %9, %cst_6 [1] : vector<8x8xf32> to vector<8xf32>
    %11 = vector.shape_cast %10 : vector<8xf32> to vector<8x1xf32>
    %12 = vector.broadcast %11 : vector<8x1xf32> to vector<8x8xf32>
    %13 = arith.subf %9, %12 : vector<8x8xf32>
    %14 = math.exp %13 : vector<8x8xf32>
    %cst_7 = arith.constant dense<0.000000e+00> : vector<8xf32>
    %15 = vector.multi_reduction <add>, %14, %cst_7 [1] : vector<8x8xf32> to vector<8xf32>
    %16 = vector.shape_cast %15 : vector<8xf32> to vector<8x1xf32>
    %17 = tpu.reciprocal %16 {approx = true} : vector<8x1xf32> -> vector<8x1xf32>
    %18 = vector.broadcast %17 : vector<8x1xf32> to vector<8x8xf32>
    %19 = arith.mulf %14, %18 : vector<8x8xf32>
    %cst_8 = arith.constant dense<0.000000e+00> : vector<8x128xf32>
    %20 = tpu.matmul %19, %8, %cst_8 {dimension_numbers = #tpu.dot_dimension_numbers<[1], [0], [0], [1], [0, 0, 1, 1], [], []>} : vector<8x8xf32>, vector<8x128xf32>, vector<8x128xf32> -> vector<8x128xf32>
    %c0_9 = arith.constant 0 : index
    %c0_10 = arith.constant 0 : index
    %21 = vector.load %arg3[%c0_9, %c0_10] : memref<8x128xf32, #tpu.memory_space<vmem>>, vector<8x128xf32>
    tpu.vector_store %arg3[%c0_9, %c0_10], %20 {strides = array<i32>} : memref<8x128xf32, #tpu.memory_space<vmem>>, vector<8x128xf32>,
    return
  }
}

</mosaic_0001>

<bundles_post_ra>
// kernel: tpu_custom_call.1
= control target key start
LH: loop header
LB: loop body
LE: loop exit
PB: predicated region body
PF: predicated region fallthrough
CT: control target
= control target key end

     0   :  { %8 = vsyncpa [#allocation3], 0  ;;  %s776_s0 = inlined_call_operand.hbm [shape: f32[8,256], index: 0, kind: input, shape index: {}]   ;;  %s777_s1 = inlined_call_operand.hbm [shape: f32[256,384], index: 1, kind: input, shape index: {}]   ;;  %s778_s2 = inlined_call_operand.vmem [shape: f32[1,384], index: 2, kind: input, shape index: {}]   ;;  %s779_s3 = inlined_call_operand.hbm [shape: f32[8,128], index: 3, kind: output, shape index: {}]  }
   0x1   :  { %9 = vsyncpa [#allocation6], 0 }
   0x2   :  { %10 = vsyncpa [#allocation4], 0  ;;  %s698_s12 = smov [#allocation2]   ;;  %s699_s14 = smov [#allocation5]  }
   0x3   :  { %s17_s13 = sshll.u32 %s698_s12, 4  ;;  %s26_s15 = sshll.u32 %s699_s14, 4  ;;  %s18_s13 = int_to_ptr.vmem [resolvable:$true] %s17_s13  ;;  %s725_s15 = int_to_ptr.vmem [resolvable:$true] %s26_s15 }
   0x4   :  { %s626_s18 = scalar_lea.hbm %s776_s0, 256 }
   0x5   :  { %p627_p0 = scmp.ne.s32.totalorder %s776_s0, %s626_s18  ;;  %p630_p1 = scmp.lt.u32.totalorder %s626_s18, %s776_s0 }
   0x7   :  { %p632_p2 = pnand %p630_p1, %p627_p0 }
   0x9   :  { %635 = shalt.err (!%p632_p2)
}
   0xa   :  { %s636_s23 = scalar_lea.vmem %s18_s13, 256  ;;  %p641_p4 = scmp.lt.s32.totalorder %s18_s13, %s18_s13 }
   0xb   :  { %p637_p3 = scmp.ne.s32.totalorder %s18_s13, %s636_s23  ;;  %p642_p5 = scmp.lt.s32.totalorder %s636_s23, %s636_s23 }
   0xd   :  { %p643_p6 = por %p642_p5, %p641_p4 }
   0xf   :  { %p644_p7 = pnand %p643_p6, %p637_p3 }
  0x11   :  { %647 = shalt.err (!%p644_p7)
}
  0x12   :  { %20 = dma.hbm_to_vmem [thread:$0]  %s776_s0, 256, %s18_s13, [#allocation3]  }
  0x13   :  { %s648_s28 = scalar_lea.hbm %s777_s1, 12288 }
  0x14   :  { %p649_p8 = scmp.ne.s32.totalorder %s777_s1, %s648_s28  ;;  %p652_p9 = scmp.lt.u32.totalorder %s648_s28, %s777_s1 }
  0x16   :  { %p654_p10 = pnand %p652_p9, %p649_p8 }
  0x18   :  { %657 = shalt.err (!%p654_p10)
}
  0x19   :  { %s658_s6 = scalar_lea.vmem %s725_s15, 12288  ;;  %p663_p12 = scmp.lt.s32.totalorder %s725_s15, %s725_s15 }
  0x1a   :  { %p659_p11 = scmp.ne.s32.totalorder %s725_s15, %s658_s6  ;;  %p664_p13 = scmp.lt.s32.totalorder %s658_s6, %s658_s6 }
  0x1c   :  { %p665_p0 = por %p664_p13, %p663_p12 }
  0x1e   :  { %p666_p1 = pnand %p665_p0, %p659_p11 }
  0x20   :  { %669 = shalt.err (!%p666_p1)
}
  0x21   :  { %s700_s0 = smov 384   ;;  %s701_s7 = smov 24  }
  0x22   :  { %32 = dma.hbm_to_vmem [thread:$0]  %s777_s1, 12288, %s725_s15, [#allocation6], %s700_s0, %s700_s0, %s701_s7  }
  0x23   :  { %692 = dma.done.wait [#allocation3], 256  }
  0x24   :  { %693 = vsyncadd [#allocation3], 4294967040 }
  0x25   :  { %694 = dma.done.wait [#allocation6], 12288  }
  0x26   :  { %695 = vsyncadd [#allocation6], 4294955008  ;;  %v44_v0 = vld [vmem:[#allocation5 + $0x8] sm:$0xff]  ;;  %v47_v1 = vld [vmem:[#allocation5 + $0x20] sm:$0xff]  ;;  %vm703_vm0 = vmmov 0   ;;  %vm367_vm1 = vcmask 64512  }
  0x27   :  { %v43_v2 = vld [vmem:[#allocation5] sm:$0xff]  ;;  %v519_v3 = vpack.c.bf16 %v47_v1, %v44_v0  ;;  %v46_v4 = vld [vmem:[#allocation5 + $0x18] sm:$0xff]  ;;  %v53_v6 = vld [vmem:[#allocation5 + $0x50] sm:$0xff] }
  0x28   :  { %v50_v5 = vld [vmem:[#allocation5 + $0x38] sm:$0xff]  ;;  %v521_v7 = vpack.c.bf16 %v46_v4, %v43_v2  ;;  %v49_v9 = vld [vmem:[#allocation5 + $0x30] sm:$0xff]  ;;  %v52_v10 = vld [vmem:[#allocation5 + $0x48] sm:$0xff] }
  0x29   :  { %v523_v8 = vpack.c.bf16 %v53_v6, %v50_v5  ;;  %v56_v11 = vld [vmem:[#allocation5 + $0x68] sm:$0xff]  ;;  %520 = vmatprep.subr.bf16.mxu0 %v519_v3  ;;  %v59_v12 = vld [vmem:[#allocation5 + $0x80] sm:$0xff]  ;;  %v525_v13 = vpack.c.bf16 %v52_v10, %v49_v9  ;;  %v58_v16 = vld [vmem:[#allocation5 + $0x78] sm:$0xff] }
  0x2a   :  { %522 = vmatpush1.bf16.msra.mxu0 %v521_v7  ;;  %v527_v14 = vpack.c.bf16 %v59_v12, %v56_v11  ;;  %v55_v15 = vld [vmem:[#allocation5 + $0x60] sm:$0xff]  ;;  %v62_v17 = vld [vmem:[#allocation5 + $0x98] sm:$0xff]  ;;  %v65_v18 = vld [vmem:[#allocation5 + $0xb0] sm:$0xff] }
  0x2b   :  { %524 = vmatprep.subr.bf16.mxu0 %v523_v8  ;;  %v529_v19 = vpack.c.bf16 %v58_v16, %v55_v15  ;;  %v531_v20 = vpack.c.bf16 %v65_v18, %v62_v17  ;;  %v61_v21 = vld [vmem:[#allocation5 + $0x90] sm:$0xff]  ;;  %v64_v22 = vld [vmem:[#allocation5 + $0xa8] sm:$0xff]  ;;  %v71_v24 = vld [vmem:[#allocation5 + $0xe0] sm:$0xff] }
  0x2c   :  { %v68_v23 = vld [vmem:[#allocation5 + $0xc8] sm:$0xff]  ;;  %v533_v25 = vpack.c.bf16 %v64_v22, %v61_v21  ;;  %v67_v27 = vld [vmem:[#allocation5 + $0xc0] sm:$0xff]  ;;  %v70_v28 = vld [vmem:[#allocation5 + $0xd8] sm:$0xff] }
  0x2d   :  { %v535_v26 = vpack.c.bf16 %v71_v24, %v68_v23  ;;  %v74_v29 = vld [vmem:[#allocation5 + $0xf8] sm:$0xff]  ;;  %v77_v30 = vld [vmem:[#allocation5 + $0x110] sm:$0xff]  ;;  %v537_v31 = vpack.c.bf16 %v70_v28, %v67_v27  ;;  %v76_v34 = vld [vmem:[#allocation5 + $0x108] sm:$0xff] }
  0x2e   :  { %526 = vmatpush1.bf16.msra.mxu0 %v525_v13  ;;  %v539_v32 = vpack.c.bf16 %v77_v30, %v74_v29  ;;  %v73_v33 = vld [vmem:[#allocation5 + $0xf0] sm:$0xff]  ;;  %v80_v35 = vld [vmem:[#allocation5 + $0x128] sm:$0xff]  ;;  %v83_v36 = vld [vmem:[#allocation5 + $0x140] sm:$0xff] }
  0x2f   :  { %528 = vmatprep.subr.bf16.mxu0 %v527_v14  ;;  %v541_v37 = vpack.c.bf16 %v76_v34, %v73_v33  ;;  %v79_v38 = vld [vmem:[#allocation5 + $0x120] sm:$0xff]  ;;  %v82_v39 = vld [vmem:[#allocation5 + $0x138] sm:$0xff]  ;;  %v543_v40 = vpack.c.bf16 %v83_v36, %v80_v35  ;;  %v89_v42 = vld [vmem:[#allocation5 + $0x170] sm:$0xff] }
  0x30   :  { %v86_v41 = vld [vmem:[#allocation5 + $0x158] sm:$0xff]  ;;  %v93_v44 = vld [vmem:[#allocation5 + $0x190] sm:$0xff]  ;;  %v96_v45 = vld [vmem:[#allocation5 + $0x1a8] sm:$0xff]  ;;  %v545_v51 = vpack.c.bf16 %v82_v39, %v79_v38 }
  0x31   :  { %v42_v43 = vld [vmem:[#allocation2 + $0x8] sm:$0xff]  ;;  %v45_v46 = vld [vmem:[#allocation5 + $0x10] sm:$0xff]  ;;  %v583_v47 = vpack.c.bf16 %v96_v45, %v93_v44  ;;  %v48_v48 = vld [vmem:[#allocation5 + $0x28] sm:$0xff]  ;;  %v547_v57 = vpack.c.bf16 %v89_v42, %v86_v41 }
  0x32   :  { %530 = vmatpush1.bf16.msra.mxu0 %v529_v19  ;;  %220 = vmatprep.mubr.f32.mxu0 %v42_v43  ;;  %v99_v49 = vld [vmem:[#allocation5 + $0x1c0] sm:$0xff]  ;;  %v102_v50 = vld [vmem:[#allocation5 + $0x1d8] sm:$0xff]  ;;  %v585_v52 = vpack.c.bf16 %v48_v48, %v45_v46  ;;  %v105_v56 = vld [vmem:[#allocation5 + $0x1f0] sm:$0xff] }
  0x33   :  { %532 = vmatprep.subr.bf16.mxu0 %v531_v20  ;;  %291 = vmatprep.mubr.f32.mxu1 %v42_v43  ;;  %v587_v53 = vpack.c.bf16 %v102_v50, %v99_v49  ;;  %v51_v54 = vld [vmem:[#allocation5 + $0x40] sm:$0xff]  ;;  %v54_v55 = vld [vmem:[#allocation5 + $0x58] sm:$0xff]  ;;  %v85_v58 = vld [vmem:[#allocation5 + $0x150] sm:$0xff] }
  0x34   :  { %v88_v59 = vld [vmem:[#allocation5 + $0x168] sm:$0xff]  ;;  %584 = vmatprep.subr.bf16.mxu1 %v583_v47  ;;  %v95_v62 = vld [vmem:[#allocation5 + $0x1a0] sm:$0xff]  ;;  %v589_v63 = vpack.c.bf16 %v54_v55, %v51_v54  ;;  %v57_v1 = vld [vmem:[#allocation5 + $0x70] sm:$0xff] }
  0x35   :  { %v108_v60 = vld [vmem:[#allocation5 + $0x208] sm:$0xff]  ;;  %586 = vmatpush3.bf16.msra.mxu1 %v585_v52  ;;  %v549_v3 = vpack.c.bf16 %v88_v59, %v85_v58  ;;  %v111_v4 = vld [vmem:[#allocation5 + $0x220] sm:$0xff]  ;;  %v114_v5 = vld [vmem:[#allocation5 + $0x238] sm:$0xff] }
  0x36   :  { %534 = vmatpush1.bf16.msra.mxu0 %v533_v25  ;;  %v92_v61 = vld [vmem:[#allocation5 + $0x188] sm:$0xff]  ;;  %588 = vmatprep.subr.bf16.mxu1 %v587_v53  ;;  %v591_v0 = vpack.c.bf16 %v108_v60, %v105_v56  ;;  %v91_v7 = vld [vmem:[#allocation5 + $0x180] sm:$0xff]  ;;  %v94_v8 = vld [vmem:[#allocation5 + $0x198] sm:$0xff]  ;;  %v595_v12 = vpack.c.bf16 %v114_v5, %v111_v4 }
  0x37   :  { %536 = vmatprep.subr.bf16.mxu0 %v535_v26  ;;  %v60_v2 = vld [vmem:[#allocation5 + $0x88] sm:$0xff]  ;;  %v551_v6 = vpack.c.bf16 %v95_v62, %v92_v61  ;;  %v98_v9 = vld [vmem:[#allocation5 + $0x1b8] sm:$0xff]  ;;  %v101_v10 = vld [vmem:[#allocation5 + $0x1d0] sm:$0xff]  ;;  %v553_v15 = vpack.c.bf16 %v94_v8, %v91_v7 }
  0x38   :  { %v593_v11 = vpack.c.bf16 %v60_v2, %v57_v1  ;;  %v63_v13 = vld [vmem:[#allocation5 + $0xa0] sm:$0xff]  ;;  %v66_v14 = vld [vmem:[#allocation5 + $0xb8] sm:$0xff]  ;;  %v117_v16 = vld [vmem:[#allocation5 + $0x250] sm:$0xff]  ;;  %v555_v18 = vpack.c.bf16 %v101_v10, %v98_v9 }
  0x39   :  { %590 = vmatpush3.bf16.msra.mxu1 %v589_v63  ;;  %v120_v17 = vld [vmem:[#allocation5 + $0x268] sm:$0xff]  ;;  %v97_v19 = vld [vmem:[#allocation5 + $0x1b0] sm:$0xff]  ;;  %v107_v22 = vld [vmem:[#allocation5 + $0x200] sm:$0xff]  ;;  %v597_v23 = vpack.c.bf16 %v66_v14, %v63_v13 }
  0x3a   :  { %538 = vmatpush1.bf16.msra.mxu0 %v537_v31  ;;  %592 = vmatprep.subr.bf16.mxu1 %v591_v0  ;;  %v100_v20 = vld [vmem:[#allocation5 + $0x1c8] sm:$0xff]  ;;  %v599_v24 = vpack.c.bf16 %v120_v17, %v117_v16  ;;  %v69_v25 = vld [vmem:[#allocation5 + $0xd0] sm:$0xff]  ;;  %v123_v28 = vld [vmem:[#allocation5 + $0x280] sm:$0xff] }
  0x3b   :  { %540 = vmatprep.subr.bf16.mxu0 %v539_v32  ;;  %v104_v21 = vld [vmem:[#allocation5 + $0x1e8] sm:$0xff]  ;;  %v557_v27 = vpack.c.bf16 %v100_v20, %v97_v19  ;;  %v126_v29 = vld [vmem:[#allocation5 + $0x298] sm:$0xff]  ;;  %v103_v31 = vld [vmem:[#allocation5 + $0x1e0] sm:$0xff]  ;;  %v141_v19 = vlaneseq }
  0x3c   :  { %v72_v26 = vld [vmem:[#allocation5 + $0xe8] sm:$0xff]  ;;  %v559_v30 = vpack.c.bf16 %v107_v22, %v104_v21  ;;  %v106_v32 = vld [vmem:[#allocation5 + $0x1f8] sm:$0xff]  ;;  %v113_v34 = vld [vmem:[#allocation5 + $0x230] sm:$0xff]  ;;  %v603_v36 = vpack.c.bf16 %v126_v29, %v123_v28 }
  0x3d   :  { %594 = vmatpush3.bf16.msra.mxu1 %v593_v11  ;;  %v110_v33 = vld [vmem:[#allocation5 + $0x218] sm:$0xff]  ;;  %v601_v35 = vpack.c.bf16 %v72_v26, %v69_v25  ;;  %v561_v39 = vpack.c.bf16 %v106_v32, %v103_v31  ;;  %v132_v41 = vld [vmem:[#allocation5 + $0x2c8] sm:$0xff]  ;;  %v109_v43 = vld [vmem:[#allocation5 + $0x210] sm:$0xff]  ;;  %v142_v20 = vshrl.u32 %v141_v19, 7 }
  0x3e   :  { %542 = vmatpush1.bf16.msra.mxu0 %v541_v37  ;;  %596 = vmatprep.subr.bf16.mxu1 %v595_v12  ;;  %v75_v37 = vld [vmem:[#allocation5 + $0x100] sm:$0xff]  ;;  %v78_v38 = vld [vmem:[#allocation5 + $0x118] sm:$0xff]  ;;  %v563_v42 = vpack.c.bf16 %v113_v34, %v110_v33  ;;  %v112_v44 = vld [vmem:[#allocation5 + $0x228] sm:$0xff] }
  0x3f   :  { %544 = vmatprep.subr.bf16.mxu0 %v543_v40  ;;  %v129_v40 = vld [vmem:[#allocation5 + $0x2b0] sm:$0xff]  ;;  %v116_v45 = vld [vmem:[#allocation5 + $0x248] sm:$0xff]  ;;  %v119_v46 = vld [vmem:[#allocation5 + $0x260] sm:$0xff]  ;;  %v605_v47 = vpack.c.bf16 %v78_v38, %v75_v37  ;;  %v151_v26 = vsub.s32 2, %v142_v20 }
  0x40   :  { %v607_v48 = vpack.c.bf16 %v132_v41, %v129_v40  ;;  %v81_v49 = vld [vmem:[#allocation5 + $0x130] sm:$0xff]  ;;  %v84_v50 = vld [vmem:[#allocation5 + $0x148] sm:$0xff]  ;;  %v135_v52 = vld [vmem:[#allocation5 + $0x2e0] sm:$0xff]  ;;  %v567_v54 = vpack.c.bf16 %v119_v46, %v116_v45 }
  0x41   :  { %598 = vmatpush3.bf16.msra.mxu1 %v597_v23  ;;  %v138_v53 = vld [vmem:[#allocation5 + $0x2f8] sm:$0xff]  ;;  %v115_v55 = vld [vmem:[#allocation5 + $0x240] sm:$0xff]  ;;  %v125_v58 = vld [vmem:[#allocation5 + $0x290] sm:$0xff]  ;;  %v609_v59 = vpack.c.bf16 %v84_v50, %v81_v49 }
  0x42   :  { %546 = vmatpush1.bf16.msra.mxu0 %v545_v51  ;;  %600 = vmatprep.subr.bf16.mxu1 %v599_v24  ;;  %v565_v51 = vpack.c.bf16 %v112_v44, %v109_v43  ;;  %v118_v56 = vld [vmem:[#allocation5 + $0x258] sm:$0xff]  ;;  %v611_v60 = vpack.c.bf16 %v138_v53, %v135_v52  ;;  %v87_v61 = vld [vmem:[#allocation5 + $0x160] sm:$0xff]  ;;  %v121_v1 = vld [vmem:[#allocation5 + $0x270] sm:$0xff]  ;;  %v147_v24 = vsub.s32 1, %v142_v20 }
  0x43   :  { %548 = vmatprep.subr.bf16.mxu0 %v547_v57  ;;  %v122_v57 = vld [vmem:[#allocation5 + $0x278] sm:$0xff]  ;;  %v569_v63 = vpack.c.bf16 %v118_v56, %v115_v55  ;;  %v124_v2 = vld [vmem:[#allocation5 + $0x288] sm:$0xff]  ;;  %v131_v4 = vld [vmem:[#allocation5 + $0x2c0] sm:$0xff] }
  0x44   :  { %v90_v62 = vld [vmem:[#allocation5 + $0x178] sm:$0xff]  ;;  %v571_v0 = vpack.c.bf16 %v125_v58, %v122_v57  ;;  %v127_v8 = vld [vmem:[#allocation5 + $0x2a0] sm:$0xff]  ;;  %v137_v11 = vld [vmem:[#allocation5 + $0x2f0] sm:$0xff] }
  0x45   :  { %602 = vmatpush3.bf16.msra.mxu1 %v601_v35  ;;  %v613_v5 = vpack.c.bf16 %v90_v62, %v87_v61  ;;  %v130_v9 = vld [vmem:[#allocation5 + $0x2b8] sm:$0xff]  ;;  %v41_v13 = vld [vmem:[#allocation2] sm:$0xff]  ;;  %v136_v16 = vld [vmem:[#allocation5 + $0x2e8] sm:$0xff] }
  0x46   :  { %550 = vmatpush1.bf16.msra.mxu0 %v549_v3  ;;  %604 = vmatprep.subr.bf16.mxu1 %v603_v36  ;;  %v128_v3 = vld [vmem:[#allocation5 + $0x2a8] sm:$0xff]  ;;  %v134_v10 = vld [vmem:[#allocation5 + $0x2d8] sm:$0xff]  ;;  %v577_v12 = vpack.c.bf16 %v130_v9, %v127_v8  ;;  %v139_v25 = vld [vmem:[%s778_s2] sm:$0x7]  ;;  %s704_s2 = smov [#allocation7]  }
  0x47   :  { %552 = vmatprep.subr.bf16.mxu0 %v551_v6  ;;  %v573_v6 = vpack.c.bf16 %v124_v2, %v121_v1  ;;  %v575_v7 = vpack.c.bf16 %v131_v4, %v128_v3  ;;  %v579_v14 = vpack.c.bf16 %v137_v11, %v134_v10  ;;  %v148_v28 = vrot.slane %v139_v25, %v147_v24  ;;  %s459_s11 = sshll.u32 %s704_s2, 4  ;;  %s460_s11 = int_to_ptr.vmem [resolvable:$true] %s459_s11 }
  0x48   :  { %s670_s12 = scalar_lea.vmem %s460_s11, 128  ;;  %p675_p3 = scmp.lt.s32.totalorder %s460_s11, %s460_s11 }
  0x49   :  { %606 = vmatpush3.bf16.msra.mxu1 %v605_v47  ;;  %p671_p2 = scmp.ne.s32.totalorder %s460_s11, %s670_s12  ;;  %p676_p4 = scmp.lt.s32.totalorder %s670_s12, %s670_s12 }
  0x4a   :  { %554 = vmatpush1.bf16.msra.mxu0 %v553_v15  ;;  %608 = vmatprep.subr.bf16.mxu1 %v607_v48  ;;  %v133_v15 = vld [vmem:[#allocation5 + $0x2d0] sm:$0xff] }
  0x4b   :  { %556 = vmatprep.subr.bf16.mxu0 %v555_v18  ;;  %v581_v17 = vpack.c.bf16 %v136_v16, %v133_v15  ;;  %v702_v18 = vmov 0.0   ;;  %p677_p5 = por %p676_p4, %p675_p3 }
  0x4d   :  { %610 = vmatpush3.bf16.msra.mxu1 %v609_v59  ;;  %p678_p6 = pnand %p677_p5, %p671_p2 }
  0x4e   :  { %558 = vmatpush1.bf16.msra.mxu0 %v557_v27  ;;  %612 = vmatprep.subr.bf16.mxu1 %v611_v60  ;;  %v143_v27 = vsub.s32 0, %v142_v20 }
  0x4f   :  { %560 = vmatprep.subr.bf16.mxu0 %v559_v30  ;;  %v152_v30 = vrot.slane %v139_v25, %v151_v26 }
  0x50   :  { %v144_v31 = vrot.slane %v139_v25, %v143_v27 }
  0x51   :  { %614 = vmatpush3.bf16.msra.mxu1 %v613_v5 }
  0x52   :  { %562 = vmatpush1.bf16.msra.mxu0 %v561_v39  ;;  %509 = vmatprep.subr.mxu1 %v702_v18 }
  0x53   :  { %564 = vmatprep.subr.bf16.mxu0 %v563_v42 }
  0x54   :  { %292 = vmatmul.mubr.f32.vlgmr.msra.gmra.mrb[0].mxu1 %v41_v13 }
  0x55   :  { %511 = vmatprep.mubr.msk.f32.mxu1 %vm703_vm0, %v702_v18 }
  0x56   :  { %566 = vmatpush1.bf16.msra.mxu0 %v565_v51 }
  0x57   :  { %568 = vmatprep.subr.bf16.mxu0 %v567_v54 }
  0x5a   :  { %570 = vmatpush1.bf16.msra.mxu0 %v569_v63 }
  0x5b   :  { %572 = vmatprep.subr.bf16.mxu0 %v571_v0 }
  0x5e   :  { %574 = vmatpush1.bf16.msra.mxu0 %v573_v6 }
  0x5f   :  { %576 = vmatprep.subr.bf16.mxu0 %v575_v7 }
  0x62   :  { %578 = vmatpush1.bf16.msra.mxu0 %v577_v12 }
  0x63   :  { %580 = vmatprep.subr.bf16.mxu0 %v579_v14 }
  0x66   :  { %582 = vmatpush1.bf16.msra.mxu0 %v581_v17 }
  0x69   :  { %221 = vmatmul.mubr.f32.vlgmr.msra.gmra.mrb[0].mxu0 %v41_v13 }
 0x127   :  { %v502_v21 = vpop.f32.mrb[0].mxu1 }
 0x128   :  { %v503_v22 = vpop.f32.mrb[1].mxu1 }
 0x129   :  { %v504_v23 = vadd.f32 %v503_v22, %v502_v21 }
 0x12b   :  { %v294_v34 = vadd.f32 %v504_v23, %v152_v30 }
 0x13c   :  { %v222_v29 = vpop.f32.mrb[0].mxu0 }
 0x13d   :  { %v224_v32 = vpop.f32.mrb[1].mxu0  ;;  %v223_v35 = vadd.f32 %v222_v29, %v144_v31 }
 0x13e   :  { %v225_v33 = vadd.f32 %v224_v32, %v148_v28 }
 0x140   :  { %510 = vmatpush3.xpose.msra.mxu1 %v225_v33 }
 0x141   :  { %514 = vmatprep.subr.mxu1 %v702_v18 }
 0x143   :  { %512 = vmatmul.mubr.f32.vlgmr.msra.gmra.mrb[2].mxu1 %v223_v35 }
 0x144   :  { %515 = vmatpush3.msra.mxu1 %v294_v34  ;;  %516 = vmatprep.mubr.msk.f32.mxu1 %vm703_vm0, %v702_v18 }
 0x216   :  { %v363_v36 = vpop.f32.mrb[2].mxu1 }
 0x217   :  { %v513_v37 = vpop.f32.mrb[3].mxu1  ;;  %v368_v38 = vsel %vm367_vm1, %v363_v36, -inf }
 0x218   :  { %369 = vmax.xlane.f32.xlu0 %v368_v38 }
 0x2a5   :  { %v370_v39 = vpop.xlane.xlu0 %369 }
 0x2a6   :  { %v371_v40 = vsub.f32 %v363_v36, %v370_v39 }
 0x2a8   :  { %v372_v41 = vmul.f32 1.442695, %v371_v40 }
 0x2aa   :  { %622 = vpow2.f32 %v372_v41 }
 0x2b4   :  { %v623_v42 = vpop.eup %622 }
 0x2b5   :  { %v374_v43 = vsel %vm367_vm1, %v623_v42, 0.0 }
 0x2b6   :  { %375 = vadd.xlane.f32.xlu0 %v374_v43 }
 0x343   :  { %v376_v44 = vpop.xlane.xlu0 %375 }
 0x344   :  { %624 = vrcp.f32 %v376_v44 }
 0x34e   :  { %v625_v45 = vpop.eup %624 }
 0x34f   :  { %v378_v46 = vmul.f32 %v625_v45, %v623_v42 }
 0x351   :  { %517 = vmatmul.mubr.msk.f32.vlgmr.msra.gmra.mrb[4].mxu1 %vm367_vm1, %v378_v46 }
 0x424   :  { %v448_v47 = vpop.f32.mrb[4].mxu1 }
 0x425   :  { %452 = vst [vmem:[#allocation7] sm:$0xff] %v448_v47  ;;  %v518_v48 = vpop.f32.mrb[5].mxu1 }
 0x426   :  { %681 = shalt.err (!%p678_p6)
}
 0x427   :  { %s682_s15 = scalar_lea.hbm %s779_s3, 128 }
 0x428   :  { %p683_p7 = scmp.ne.s32.totalorder %s779_s3, %s682_s15  ;;  %p686_p8 = scmp.lt.u32.totalorder %s682_s15, %s779_s3 }
 0x42a   :  { %p688_p9 = pnand %p686_p8, %p683_p7 }
 0x42c   :  { %691 = shalt.err (!%p688_p9)
}
 0x42d   :  { %462 = dma.vmem_to_hbm [thread:$0]  %s460_s11, 128, %s779_s3, [#allocation4]  }
 0x42e   :  { %696 = dma.done.wait [#allocation4], 128  }
 0x42f   :  { %697 = vsyncadd [#allocation4], 4294967168 }
 0x430   :  { %466 = vsyncpa [#allocation3], 1 }
 0x431   :  { %467 = vsyncpa [#allocation6], 1 }
 0x432   :  { %468 = vsyncpa [#allocation4], 1 }

</bundles_post_ra>
